<compile_context>
chip_gen: v7x
topology: tpu7x:2x2x1
jax: 0.10.0
libtpu: 0.0.40
codegen_flags: <defaults>
</compile_context>

<pallas_src>
import jax
import jax.numpy as jnp
from jax import lax
from jax.experimental import pallas as pl
from jax.experimental.pallas import tpu as pltpu


# ----------------------------------------------------------------------------
# Fused Pallas kernel: conv-matmul + SiLU + 1x1 head + loss partial sums
# ----------------------------------------------------------------------------

def _fused_detector_loss_kernel(patches_ref, tgt_ref, w1t_ref, b1_ref,
                                w2t_ref, b2_ref, out_ref):
    """One (batch, M-tile) grid step, channels-on-sublanes / M-on-lanes.

    patches: (Kp, tm) bf16
    tgt:     (8, tm)  bf16, rows = [box*4, obj, cls, valid, 0]
    w1t: (16, Kp) bf16   b1: (16, 1) f32
    w2t: (8, 16)  f32    b2: (8, 1)  f32
    out: (1, 1, 8, 128) f32, row 0 lanes 0..2 =
         [sum(bce_obj*valid), sum(bce_cls*obj), sum(|box_p-box_t|*obj)]
    """
    # backbone 3x3/s2 conv as matmul: (16, Kp) @ (Kp, tm) -> (16, tm), f32 acc
    x = jnp.dot(w1t_ref[...], patches_ref[...],
                preferred_element_type=jnp.float32)
    x = x + b1_ref[...]
    # SiLU; reciprocal runs on the EUP slot (exact, per review tolerance note)
    x = x * pl.reciprocal(1.0 + jnp.exp(-x))

    # 1x1 detection head fused in the same tile; tiny (8,16) matmul kept in
    # f32 (no bf16 repack of the activation).
    pred = jnp.dot(w2t_ref[...], x, preferred_element_type=jnp.float32)
    pred = pred + b2_ref[...]                                # (8, tm)

    tgt = tgt_ref[...].astype(jnp.float32)                   # (8, tm)
    obj_w = tgt[4:5, :]                                      # (1, tm)
    valid = tgt[6:7, :]                                      # (1, tm)

    # numerically-stable BCE-with-logits, only on the obj/cls rows (2 of 8)
    p_oc = pred[4:6, :]
    t_oc = tgt[4:6, :]
    bce = (jnp.maximum(p_oc, 0.0) - p_oc * t_oc
           + jnp.log1p(jnp.exp(-jnp.abs(p_oc))))             # (2, tm)
    obj_sum = jnp.sum(bce[0:1, :] * valid)
    cls_sum = jnp.sum(bce[1:2, :] * obj_w)

    # L1 only on the four box rows, weighted by obj
    box_sum = jnp.sum(jnp.abs(pred[0:4, :] - tgt[0:4, :]) * obj_w)

    # lane-dense (8,128) partial-sum tile: sums in row 0, lanes 0..2
    row = lax.broadcasted_iota(jnp.int32, (8, 128), 0)
    col = lax.broadcasted_iota(jnp.int32, (8, 128), 1)
    out = jnp.where((row == 0) & (col == 0), obj_sum,
          jnp.where((row == 0) & (col == 1), cls_sum,
          jnp.where((row == 0) & (col == 2), box_sum, 0.0)))
    out_ref[...] = out[None, None, :, :]


def fused_detector_losses(patches, tgt, w1t, b1, w2t, b2, tm):
    """patches: (B, Kp, Mp) bf16, tgt: (B, 8, Mp) bf16 -> (B, G, 8, 128)."""
    B, Kp, Mp = patches.shape
    assert Mp % tm == 0
    G = Mp // tm
    Ct = tgt.shape[1]
    Cmid = w1t.shape[0]
    Cout = w2t.shape[0]
    return pl.pallas_call(
        _fused_detector_loss_kernel,
        out_shape=jax.ShapeDtypeStruct((B, G, 8, 128), jnp.float32),
        grid=(B, G),
        in_specs=[
            pl.BlockSpec((None, Kp, tm), lambda b, g: (b, 0, g)),
            pl.BlockSpec((None, Ct, tm), lambda b, g: (b, 0, g)),
            pl.BlockSpec((Cmid, Kp), lambda b, g: (0, 0)),
            pl.BlockSpec((Cmid, 1), lambda b, g: (0, 0)),
            pl.BlockSpec((Cout, Cmid), lambda b, g: (0, 0)),
            pl.BlockSpec((Cout, 1), lambda b, g: (0, 0)),
        ],
        out_specs=pl.BlockSpec((1, 1, 8, 128), lambda b, g: (b, g, 0, 0)),
        compiler_params=pltpu.CompilerParams(
            dimension_semantics=("parallel", "parallel")),
    )(patches, tgt, w1t, b1, w2t, b2)


# ----------------------------------------------------------------------------
# Glue (plain JAX): im2col (K-major layout), parameter init, target building
# ----------------------------------------------------------------------------

def im2col_3x3_s2_nchw(x):
    """x: (B, C, H, W) NCHW, pad=1, stride=2 -> (B, 9*C, (H//2)*(W//2)).
    K ordered tap-major / channel-minor (tap = dy*3 + dx); positions on the
    trailing axis (future lane axis). No NCHW->NHWC transpose pass needed."""
    B, C, H, W = x.shape
    Hc, Wc = H // 2, W // 2
    xp = jnp.pad(x, ((0, 0), (0, 0), (1, 1), (1, 1)))
    taps = []
    for dy in range(3):
        for dx in range(3):
            taps.append(xp[:, :, dy:dy + H:2, dx:dx + W:2])    # (B, C, Hc, Wc)
    p = jnp.stack(taps, axis=1)                                # (B, 9, C, Hc, Wc)
    return p.reshape(B, 9 * C, Hc * Wc)


def init_params(key):
    # conv1: 3x3/s2, Cin=3 -> Cmid=16 ; head: 1x1, 16 -> 8
    # (4 box, 1 obj, 1 cls, 2 pad channels)
    k1, k2 = jax.random.split(key, 2)
    cin, cmid, cout = 3, 16, 8
    w1 = jax.random.normal(k1, (3 * 3 * cin, cmid), jnp.float32) * 0.1
    b1 = jnp.zeros((cmid,), jnp.float32)
    w2 = jax.random.normal(k2, (cmid, cout), jnp.float32) * 0.1
    b2 = jnp.zeros((cout,), jnp.float32)
    return dict(w1=w1, b1=b1, w2=w2, b2=b2)


def build_packed_targets(gt_instances, B, Hc, Wc, stride):
    """gt_instances: (N, 6) rows = (batch_idx, label, x1, y1, x2, y2)
    -> (B, Hc, Wc, 8) f32 slab [box/stride (4), obj, cls, valid, 0]."""
    bidx = gt_instances[:, 0].astype(jnp.int32)
    boxes = gt_instances[:, 2:6]
    cx = (boxes[:, 0] + boxes[:, 2]) * 0.5 / stride
    cy = (boxes[:, 1] + boxes[:, 3]) * 0.5 / stride
    gx = jnp.clip(cx.astype(jnp.int32), 0, Wc - 1)
    gy = jnp.clip(cy.astype(jnp.int32), 0, Hc - 1)
    obj_t = jnp.zeros((B, Hc, Wc), jnp.float32).at[bidx, gy, gx].set(1.0)
    cls_t = jnp.zeros((B, Hc, Wc), jnp.float32).at[bidx, gy, gx].set(1.0)
    box_t = jnp.zeros((B, Hc, Wc, 4), jnp.float32).at[bidx, gy, gx].set(
        boxes / float(stride))
    valid = jnp.ones((B, Hc, Wc, 1), jnp.float32)
    zero = jnp.zeros((B, Hc, Wc, 1), jnp.float32)
    return jnp.concatenate(
        [box_t, obj_t[..., None], cls_t[..., None], valid, zero], axis=-1)


# ----------------------------------------------------------------------------
# WrappedDetector.forward equivalent
# ----------------------------------------------------------------------------

def wrapped_detector_forward(params, imgs_nchw, instance_datas, img_metas):
    """Mirrors WrappedDetector.forward: builds per-image gt targets from the
    (batch_idx, label, x1,y1,x2,y2) instance table, runs the detector, and
    returns {loss_cls, loss_obj, loss_bbox} where each loss has been
    mean-reduced (the `reduce` == torch.mean step is fused into the kernel's
    partial sums + the wrapper-side divide)."""
    del img_metas  # metainfo only affects metadata in the original, not math
    B, C, H, W = imgs_nchw.shape
    stride = 2
    Hc, Wc = H // stride, W // stride
    Mimg = Hc * Wc
    K = 9 * C
    Kp = ((K + 15) // 16) * 16             # bf16 sublane-packing friendly K

    # lane-dim M tile: multiple of 128, up to 8192 positions per tile.
    tm = min(8192, ((Mimg + 127) // 128) * 128)
    G = (Mimg + tm - 1) // tm
    Mp = G * tm

    # Patch slab built straight from NCHW in (K, M) layout, emitted in bf16.
    # Padded rows/cols are masked in-kernel by the 'valid'/'obj' target rows so
    # the exact denominators below stay correct.
    patches = im2col_3x3_s2_nchw(imgs_nchw).astype(jnp.bfloat16)
    patches = jnp.pad(patches, ((0, 0), (0, Kp - K), (0, Mp - Mimg)))

    tgt = build_packed_targets(instance_datas, B, Hc, Wc, stride)
    tgt = jnp.transpose(tgt, (0, 3, 1, 2)).reshape(B, 8, Mimg)
    tgt = jnp.pad(tgt, ((0, 0), (0, 0), (0, Mp - Mimg)))   # pad cols: valid=0
    tgt = tgt.astype(jnp.bfloat16)

    w1t = jnp.pad(params["w1"], ((0, Kp - K), (0, 0))).T.astype(jnp.bfloat16)
    b1 = params["b1"].reshape(-1, 1)
    w2t = params["w2"].T.astype(jnp.float32)
    b2 = params["b2"].reshape(-1, 1)

    partial = fused_detector_losses(patches, tgt, w1t, b1, w2t, b2, tm)

    obj_sum = jnp.sum(partial[:, :, 0, 0])
    cls_sum = jnp.sum(partial[:, :, 0, 1])
    box_sum = jnp.sum(partial[:, :, 0, 2])

    denom = float(B * Mimg)   # true element counts (padding excluded in-kernel)
    # equivalent of `losses = {k: reduce(losses[k]) ...}` -> scalar per key
    return {
        "loss_cls": cls_sum / denom,
        "loss_obj": obj_sum / denom,
        "loss_bbox": box_sum / (4.0 * denom),
    }


# ----------------------------------------------------------------------------
# main
# ----------------------------------------------------------------------------

if __name__ == "__main__":
    key = jax.random.PRNGKey(0)
    k_img, k_c, k_s, k_p = jax.random.split(key, 4)

    B, C, H, W = 2, 3, 16, 16                 # small stand-in for 768x1280x3
    imgs = jax.random.normal(k_img, (B, C, H, W), jnp.float32)   # NCHW input

    # instance_datas: (N, 6) = (batch_idx, label, x1, y1, x2, y2)
    n_gt = 4
    centers = jax.random.uniform(k_c, (n_gt, 2), minval=3.0, maxval=13.0)
    halfsz = jax.random.uniform(k_s, (n_gt, 2), minval=0.5, maxval=2.0)
    boxes = jnp.concatenate([centers - halfsz, centers + halfsz], axis=-1)
    bidx = jnp.array([0.0, 0.0, 1.0, 1.0], jnp.float32)
    labels = jnp.zeros((n_gt,), jnp.float32)  # single-class (COTS) detector
    instance_datas = jnp.concatenate(
        [bidx[:, None], labels[:, None], boxes], axis=-1)

    img_metas = [dict(ori_shape=(H, W, C), img_shape=(H, W, C),
                      pad_shape=(H, W, C), scale_factor=1.0)
                 for _ in range(B)]

    params = init_params(k_p)
    losses = wrapped_detector_forward(params, imgs, instance_datas, img_metas)
    jax.block_until_ready(losses)

    for k in ("loss_cls", "loss_obj", "loss_bbox"):
        assert losses[k].shape == () and jnp.isfinite(losses[k])
    print("KERNEL_OK")
</pallas_src>

<mosaic_0001>
module attributes {stable_mosaic.version = 11 : i64} {
  func.func @_fused_detector_loss_kernel(%arg0: i32, %arg1: i32, %arg2: memref<1x32x128xbf16, #tpu.memory_space<vmem>>, %arg3: memref<1x8x128xbf16, #tpu.memory_space<vmem>>, %arg4: memref<16x32xbf16, #tpu.memory_space<vmem>>, %arg5: memref<16x1xf32, #tpu.memory_space<vmem>>, %arg6: memref<8x16xf32, #tpu.memory_space<vmem>>, %arg7: memref<8x1xf32, #tpu.memory_space<vmem>>, %arg8: memref<1x1x8x128xf32, #tpu.memory_space<vmem>>) attributes {dimension_semantics = [#tpu.dimension_semantics<parallel>, #tpu.dimension_semantics<parallel>], iteration_bounds = array<i64: 2, 1>, scalar_prefetch = 0 : i64, scratch_operands = 0 : i64, tpu.core_type = #tpu.core_type<tc>, window_params = [{transform_indices = @transform_0, window_bounds = array<i64: 1, 32, 128>}, {transform_indices = @transform_1, window_bounds = array<i64: 1, 8, 128>}, {pipeline_mode = #tpu.pipeline_mode<synchronous>, transform_indices = @transform_2, window_bounds = array<i64: 16, 32>}, {pipeline_mode = #tpu.pipeline_mode<synchronous>, transform_indices = @transform_3, window_bounds = array<i64: 16, 1>}, {pipeline_mode = #tpu.pipeline_mode<synchronous>, transform_indices = @transform_4, window_bounds = array<i64: 8, 16>}, {pipeline_mode = #tpu.pipeline_mode<synchronous>, transform_indices = @transform_5, window_bounds = array<i64: 8, 1>}, {transform_indices = @transform_6, window_bounds = array<i64: 1, 1, 8, 128>}]} {
    %c0 = arith.constant 0 : index
    %c0_0 = arith.constant 0 : index
    %0 = vector.load %arg4[%c0, %c0_0] : memref<16x32xbf16, #tpu.memory_space<vmem>>, vector<16x32xbf16>
    %c0_1 = arith.constant 0 : index
    %c0_2 = arith.constant 0 : index
    %c0_3 = arith.constant 0 : index
    %1 = vector.load %arg2[%c0_1, %c0_2, %c0_3] : memref<1x32x128xbf16, #tpu.memory_space<vmem>>, vector<1x32x128xbf16>
    %2 = vector.shape_cast %1 : vector<1x32x128xbf16> to vector<32x128xbf16>
    %cst = arith.constant dense<0.000000e+00> : vector<16x128xf32>
    %3 = tpu.matmul %0, %2, %cst {dimension_numbers = #tpu.dot_dimension_numbers<[1], [0], [0], [1], [0, 0, 1, 1], [], []>} : vector<16x32xbf16>, vector<32x128xbf16>, vector<16x128xf32> -> vector<16x128xf32>
    %c0_4 = arith.constant 0 : index
    %c0_5 = arith.constant 0 : index
    %4 = vector.load %arg5[%c0_4, %c0_5] : memref<16x1xf32, #tpu.memory_space<vmem>>, vector<16x1xf32>
    %5 = vector.broadcast %4 : vector<16x1xf32> to vector<16x128xf32>
    %6 = arith.addf %3, %5 : vector<16x128xf32>
    %cst_6 = arith.constant 0.000000e+00 : f32
    %7 = vector.broadcast %cst_6 : f32 to vector<16x128xf32>
    %8 = arith.subf %7, %6 : vector<16x128xf32>
    %9 = math.exp %8 : vector<16x128xf32>
    %cst_7 = arith.constant 1.000000e+00 : f32
    %10 = vector.broadcast %cst_7 : f32 to vector<16x128xf32>
    %11 = arith.addf %10, %9 : vector<16x128xf32>
    %12 = tpu.reciprocal %11 : vector<16x128xf32> -> vector<16x128xf32>
    %13 = arith.mulf %6, %12 : vector<16x128xf32>
    %c0_8 = arith.constant 0 : index
    %c0_9 = arith.constant 0 : index
    %14 = vector.load %arg6[%c0_8, %c0_9] : memref<8x16xf32, #tpu.memory_space<vmem>>, vector<8x16xf32>
    %cst_10 = arith.constant dense<0.000000e+00> : vector<8x128xf32>
    %15 = tpu.matmul %14, %13, %cst_10 {dimension_numbers = #tpu.dot_dimension_numbers<[1], [0], [0], [1], [0, 0, 1, 1], [], []>} : vector<8x16xf32>, vector<16x128xf32>, vector<8x128xf32> -> vector<8x128xf32>
    %c0_11 = arith.constant 0 : index
    %c0_12 = arith.constant 0 : index
    %16 = vector.load %arg7[%c0_11, %c0_12] : memref<8x1xf32, #tpu.memory_space<vmem>>, vector<8x1xf32>
    %17 = vector.broadcast %16 : vector<8x1xf32> to vector<8x128xf32>
    %18 = arith.addf %15, %17 : vector<8x128xf32>
    %c0_13 = arith.constant 0 : index
    %c0_14 = arith.constant 0 : index
    %c0_15 = arith.constant 0 : index
    %19 = vector.load %arg3[%c0_13, %c0_14, %c0_15] : memref<1x8x128xbf16, #tpu.memory_space<vmem>>, vector<1x8x128xbf16>
    %20 = vector.shape_cast %19 : vector<1x8x128xbf16> to vector<8x128xbf16>
    %21 = arith.extf %20 : vector<8x128xbf16> to vector<8x128xf32>
    %22 = vector.extract_strided_slice %21 {offsets = [4, 0], sizes = [1, 128], strides = [1, 1]} : vector<8x128xf32> to vector<1x128xf32>
    %23 = vector.extract_strided_slice %21 {offsets = [6, 0], sizes = [1, 128], strides = [1, 1]} : vector<8x128xf32> to vector<1x128xf32>
    %24 = vector.extract_strided_slice %18 {offsets = [4, 0], sizes = [2, 128], strides = [1, 1]} : vector<8x128xf32> to vector<2x128xf32>
    %25 = vector.extract_strided_slice %21 {offsets = [4, 0], sizes = [2, 128], strides = [1, 1]} : vector<8x128xf32> to vector<2x128xf32>
    %cst_16 = arith.constant 0.000000e+00 : f32
    %26 = vector.broadcast %cst_16 : f32 to vector<2x128xf32>
    %27 = arith.maximumf %24, %26 : vector<2x128xf32>
    %28 = arith.mulf %24, %25 : vector<2x128xf32>
    %29 = arith.subf %27, %28 : vector<2x128xf32>
    %30 = math.absf %24 : vector<2x128xf32>
    %cst_17 = arith.constant 0.000000e+00 : f32
    %31 = vector.broadcast %cst_17 : f32 to vector<2x128xf32>
    %32 = arith.subf %31, %30 : vector<2x128xf32>
    %33 = math.exp %32 : vector<2x128xf32>
    %34 = math.log1p %33 : vector<2x128xf32>
    %35 = arith.addf %29, %34 : vector<2x128xf32>
    %36 = vector.extract_strided_slice %35 {offsets = [0, 0], sizes = [1, 128], strides = [1, 1]} : vector<2x128xf32> to vector<1x128xf32>
    %37 = arith.mulf %36, %23 : vector<1x128xf32>
    %38 = vector.shape_cast %37 : vector<1x128xf32> to vector<1x1x128xf32>
    %cst_18 = arith.constant dense<0.000000e+00> : vector<1xf32>
    %39 = vector.multi_reduction <add>, %38, %cst_18 [1, 2] : vector<1x1x128xf32> to vector<1xf32>
    %40 = vector.shape_cast %39 : vector<1xf32> to vector<1x1x1xf32>
    %41 = vector.extract %40[0, 0, 0] : f32 from vector<1x1x1xf32>
    %42 = vector.extract_strided_slice %35 {offsets = [1, 0], sizes = [1, 128], strides = [1, 1]} : vector<2x128xf32> to vector<1x128xf32>
    %43 = arith.mulf %42, %22 : vector<1x128xf32>
    %44 = vector.shape_cast %43 : vector<1x128xf32> to vector<1x1x128xf32>
    %cst_19 = arith.constant dense<0.000000e+00> : vector<1xf32>
    %45 = vector.multi_reduction <add>, %44, %cst_19 [1, 2] : vector<1x1x128xf32> to vector<1xf32>
    %46 = vector.shape_cast %45 : vector<1xf32> to vector<1x1x1xf32>
    %47 = vector.extract %46[0, 0, 0] : f32 from vector<1x1x1xf32>
    %48 = vector.extract_strided_slice %18 {offsets = [0, 0], sizes = [4, 128], strides = [1, 1]} : vector<8x128xf32> to vector<4x128xf32>
    %49 = vector.extract_strided_slice %21 {offsets = [0, 0], sizes = [4, 128], strides = [1, 1]} : vector<8x128xf32> to vector<4x128xf32>
    %50 = arith.subf %48, %49 : vector<4x128xf32>
    %51 = math.absf %50 : vector<4x128xf32>
    %52 = vector.broadcast %22 : vector<1x128xf32> to vector<4x128xf32>
    %53 = arith.mulf %51, %52 : vector<4x128xf32>
    %54 = vector.shape_cast %53 : vector<4x128xf32> to vector<1x4x128xf32>
    %cst_20 = arith.constant dense<0.000000e+00> : vector<1xf32>
    %55 = vector.multi_reduction <add>, %54, %cst_20 [1, 2] : vector<1x4x128xf32> to vector<1xf32>
    %56 = vector.shape_cast %55 : vector<1xf32> to vector<1x1x1xf32>
    %57 = vector.extract %56[0, 0, 0] : f32 from vector<1x1x1xf32>
    %58 = tpu.iota {dimensions = array<i32: 0>} : vector<8x128xi32>
    %59 = tpu.iota {dimensions = array<i32: 1>} : vector<8x128xi32>
    %c0_i32 = arith.constant 0 : i32
    %60 = vector.broadcast %c0_i32 : i32 to vector<8x128xi32>
    %61 = arith.cmpi eq, %58, %60 : vector<8x128xi32>
    %c0_i32_21 = arith.constant 0 : i32
    %62 = vector.broadcast %c0_i32_21 : i32 to vector<8x128xi32>
    %63 = arith.cmpi eq, %59, %62 : vector<8x128xi32>
    %64 = arith.andi %61, %63 : vector<8x128xi1>
    %c0_i32_22 = arith.constant 0 : i32
    %65 = vector.broadcast %c0_i32_22 : i32 to vector<8x128xi32>
    %66 = arith.cmpi eq, %58, %65 : vector<8x128xi32>
    %c1_i32 = arith.constant 1 : i32
    %67 = vector.broadcast %c1_i32 : i32 to vector<8x128xi32>
    %68 = arith.cmpi eq, %59, %67 : vector<8x128xi32>
    %69 = arith.andi %66, %68 : vector<8x128xi1>
    %c0_i32_23 = arith.constant 0 : i32
    %70 = vector.broadcast %c0_i32_23 : i32 to vector<8x128xi32>
    %71 = arith.cmpi eq, %58, %70 : vector<8x128xi32>
    %c2_i32 = arith.constant 2 : i32
    %72 = vector.broadcast %c2_i32 : i32 to vector<8x128xi32>
    %73 = arith.cmpi eq, %59, %72 : vector<8x128xi32>
    %74 = arith.andi %71, %73 : vector<8x128xi1>
    %cst_24 = arith.constant 0.000000e+00 : f32
    %75 = vector.broadcast %57 : f32 to vector<8x128xf32>
    %76 = vector.broadcast %cst_24 : f32 to vector<8x128xf32>
    %77 = arith.select %74, %75, %76 : vector<8x128xi1>, vector<8x128xf32>
    %78 = vector.broadcast %47 : f32 to vector<8x128xf32>
    %79 = arith.select %69, %78, %77 : vector<8x128xi1>, vector<8x128xf32>
    %80 = vector.broadcast %41 : f32 to vector<8x128xf32>
    %81 = arith.select %64, %80, %79 : vector<8x128xi1>, vector<8x128xf32>
    %82 = vector.shape_cast %81 : vector<8x128xf32> to vector<1x1x8x128xf32>
    %c0_25 = arith.constant 0 : index
    %c0_26 = arith.constant 0 : index
    %c0_27 = arith.constant 0 : index
    %c0_28 = arith.constant 0 : index
    %83 = vector.load %arg8[%c0_25, %c0_26, %c0_27, %c0_28] : memref<1x1x8x128xf32, #tpu.memory_space<vmem>>, vector<1x1x8x128xf32>
    tpu.vector_store %arg8[%c0_25, %c0_26, %c0_27, %c0_28], %82 {strides = array<i32>} : memref<1x1x8x128xf32, #tpu.memory_space<vmem>>, vector<1x1x8x128xf32>,
    return
  }
  func.func @transform_0(%arg0: i32, %arg1: i32) -> (i32, i32, i32) {
    %c0_i32 = arith.constant 0 : i32
    %c0_i32_0 = arith.constant 0 : i32
    return %arg0, %c0_i32, %arg1 : i32, i32, i32
  }
  func.func @transform_1(%arg0: i32, %arg1: i32) -> (i32, i32, i32) {
    %c0_i32 = arith.constant 0 : i32
    %c0_i32_0 = arith.constant 0 : i32
    return %arg0, %c0_i32, %arg1 : i32, i32, i32
  }
  func.func @transform_2(%arg0: i32, %arg1: i32) -> (i32, i32) {
    %c0_i32 = arith.constant 0 : i32
    %c0_i32_0 = arith.constant 0 : i32
    %c0_i32_1 = arith.constant 0 : i32
    return %c0_i32, %c0_i32_0 : i32, i32
  }
  func.func @transform_3(%arg0: i32, %arg1: i32) -> (i32, i32) {
    %c0_i32 = arith.constant 0 : i32
    %c0_i32_0 = arith.constant 0 : i32
    %c0_i32_1 = arith.constant 0 : i32
    return %c0_i32, %c0_i32_0 : i32, i32
  }
  func.func @transform_4(%arg0: i32, %arg1: i32) -> (i32, i32) {
    %c0_i32 = arith.constant 0 : i32
    %c0_i32_0 = arith.constant 0 : i32
    %c0_i32_1 = arith.constant 0 : i32
    return %c0_i32, %c0_i32_0 : i32, i32
  }
  func.func @transform_5(%arg0: i32, %arg1: i32) -> (i32, i32) {
    %c0_i32 = arith.constant 0 : i32
    %c0_i32_0 = arith.constant 0 : i32
    %c0_i32_1 = arith.constant 0 : i32
    return %c0_i32, %c0_i32_0 : i32, i32
  }
  func.func @transform_6(%arg0: i32, %arg1: i32) -> (i32, i32, i32, i32) {
    %c0_i32 = arith.constant 0 : i32
    %c0_i32_0 = arith.constant 0 : i32
    %c0_i32_1 = arith.constant 0 : i32
    return %arg0, %arg1, %c0_i32, %c0_i32_0 : i32, i32, i32, i32
  }
}

</mosaic_0001>

<bundles_post_ra>
// kernel: tpu_custom_call.1
= control target key start
LH: loop header
LB: loop body
LE: loop exit
PB: predicated region body
PF: predicated region fallthrough
CT: control target
= control target key end

     0   :  { %11 = vsyncpa [#allocation3], 0  ;;  %s1180_s0 = inlined_call_operand.hbm [shape: bf16[2,32,128], index: 0, kind: input, shape index: {}]   ;;  %s1181_s1 = inlined_call_operand.vmem [shape: bf16[2,8,128], index: 1, kind: input, shape index: {}]   ;;  %s1182_s2 = inlined_call_operand.vmem [shape: bf16[16,32], index: 2, kind: input, shape index: {}]   ;;  %s1183_s3 = inlined_call_operand.vmem [shape: f32[16,1], index: 3, kind: input, shape index: {}]   ;;  %s1184_s4 = inlined_call_operand.vmem [shape: f32[8,16], index: 4, kind: input, shape index: {}]   ;;  %s1185_s5 = inlined_call_operand.vmem [shape: f32[8,1], index: 5, kind: input, shape index: {}]   ;;  %s1186_s6 = inlined_call_operand.hbm [shape: f32[2,1,8,128], index: 6, kind: output, shape index: {}]  }
   0x1   :  { %13 = vsyncpa [#allocation3 + $0x1], 0 }
   0x2   :  { %14 = vsyncpa [#allocation4], 0 }
   0x3   :  { %16 = vsyncpa [#allocation4 + $0x1], 0  ;;  %s982_s21 = smov 0   ;;  %s984_s22 = smov 0  }
   0x4   :  { %s986_s23 = smov 0   ;;  %s988_s24 = smov 0  }
   0x5   :  { %s990_s25 = smov 0   ;;  %s992_s26 = smov 0  }
   0x6 LB: > { %s689_s27 = sadd.s32 4294967295, %s937_s26   ;;  %s690_s28 = sadd.s32 4294967294, %s937_s26   ;;  %s937_s26 = sphi %s992_s26, %s22_s26   ;;  %s933_s25 = sphi %s990_s25, %s1201_s25   ;;  %s929_s24 = sphi %s988_s24, %s1200_s24   ;;  %s925_s23 = sphi %s986_s23, %s1199_s23   ;;  %s921_s22 = sphi %s984_s22, %s1198_s22   ;;  %s917_s21 = sphi %s982_s21, %s1197_s21  }
   0x7   : > { %s34_s29 = sadd.s32 1, %s933_s25  ;;  %s43_s30 = sadd.s32 1, %s925_s23 }
   0x8   : > { %p36_p0 = scmp.ge.s32.totalorder %s34_s29, 2  ;;  %p50_p1 = scmp.ne.s32.totalorder %s925_s23, %s921_s22 }
   0x9   : > { %p51_p2 = scmp.eq.s32.totalorder %s937_s26, 0  ;;  %p56_p3 = scmp.ne.s32.totalorder %s921_s22, %s917_s21 }
   0xa   : > { %s1203_s29 = smov (%p36_p0, %s34_s29), 0  ;;  %p57_p5 = scmp.eq.s32.totalorder %s689_s27, 0 }
   0xb   : > { %p1023_p4 = por %p51_p2, %p50_p1  ;;  %s38_s8 = ssub.s32 %s933_s25, %s1203_s29 }
   0xc   : > { %p194_p6 = scmp.eq.s32.totalorder %s689_s27, 1  ;;  %p41_p7 = scmp.eq.s32.totalorder %s38_s8, 0 }
   0xd   : > { %p1029_p8 = por %p57_p5, %p56_p3  ;;  %p200_p10 = scmp.eq.s32.totalorder %s690_s28, 1 }
   0xe   : > { %p1033_p9 = por %p194_p6, %p50_p1  ;;  %p752_p13 = scmp.lt.s32.totalorder %s937_s26, 2 }
   0xf   : > { %s1038_s11 = scalar_select %p41_p7, %s925_s23, %s43_s30  }
  0x10   : > { %s1190_s10 = scalar_select %p1033_p9, 1, 0 }
  0x11   : > { %p1040_p11 = por %p200_p10, %p56_p3  ;;  %s232_s13 = sand.u32 1, %s925_s23  }
  0x12   : > { %s693_s14 = sshll.u32 %s232_s13, 4  ;;  %s709_s15 = sshll.u32 %s933_s25, 8 }
  0x13   : > { %s1191_s12 = scalar_select %p1040_p11, 1, 0 }
  0x14   : > { %s1051_s18 = scalar_lea.hbm %s1180_s0, %s709_s15  ;;  %s236_s19 = scalar_lea.vmem [#allocation2], %s693_s14 }
  0x15   : > { %s244_s20 = sshll.u32 %s236_s19, 4  ;;  %p1057_p0 = pnand %p752_p13, %p1023_p4  ;;  %s1053_s20 = int_to_ptr.vmem [resolvable:$true] %s244_s20 }
  0x16   : > { %s1062_s28 = scalar_lea.sflag [#allocation3], %s232_s13  ;;  %s825_s30 = scalar_lea.hbm %s1051_s18, 256 }
  0x17   : > { %p826_p2 = scmp.ne.s32.totalorder %s1051_s18, %s825_s30  ;;  %p827_p3 = pneg %p1057_p0 }
  0x18   : > { %s830_s7 = scalar_lea.hbm %s1180_s0, 512  ;;  %p831_p4 = scmp.lt.u32.totalorder %s1051_s18, %s1180_s0 }
  0x19   : > { %p828_p5 = pnand %p827_p3, %p826_p2  ;;  %p832_p7 = scmp.lt.u32.totalorder %s830_s7, %s825_s30 }
  0x1a   : > { %p834_p13 = scmp.lt.u32.totalorder %s825_s30, %s1051_s18 }
  0x1b   : > { %p829_p6 = pneg %p828_p5  ;;  %p833_p10 = por %p832_p7, %p831_p4 }
  0x1d   : > { %p835_p12 = por %p834_p13, %p833_p10 }
  0x1f   : > { %p836_p1 = pnand %p835_p12, %p829_p6 }
  0x21   : > { %839 = shalt.err (!%p836_p1)
}
  0x22   : > { %s840_s13 = scalar_lea.vmem %s1053_s20, 256  ;;  %s939_s17 = smov [#allocation2]  }
  0x23   : > { %p841_p2 = scmp.ne.s32.totalorder %s1053_s20, %s840_s13  ;;  %s845_s19 = sshll.u32 %s939_s17, 4  ;;  %s846_s19 = int_to_ptr.vmem [resolvable:$false] %s845_s19 }
  0x24   : > { %s847_s8 = scalar_lea.vmem %s846_s19, 512  ;;  %p848_p9 = scmp.lt.s32.totalorder %s1053_s20, %s846_s19 }
  0x25   : > { %p843_p5 = pnand %p841_p2, %p827_p3  ;;  %p849_p4 = scmp.lt.s32.totalorder %s847_s8, %s840_s13 }
  0x27   : > { %p844_p11 = pneg %p843_p5  ;;  %p850_p7 = por %p849_p4, %p848_p9 }
  0x29   : > { %p851_p10 = pnand %p850_p7, %p844_p11 }
  0x2b   : > { %854 = shalt.err (!%p851_p10)
}
  0x2c   : > { %s940_s30 = smov 64   ;;  %s941_s14 = smov 4  }
  0x2d   : > { %747 = dma.hbm_to_vmem [thread:$0]  (!%p1057_p0), %s1051_s18, 256, %s1053_s20, %s1062_s28, %s940_s30, %s940_s30, %s941_s14  }
  0x2e   : > { %p262_p12 = scmp.lt.s32.totalorder %s937_s26, 3  ;;  %p1193_p1 = scmp.ge.s32.totalorder %s937_s26, 1 }
  0x30   : > { %p263_p3 = pnand %p1193_p1, %p262_p12 }
  0x31   : > { %s1094_s7 = sand.u32 (!%p263_p3), 1, %s921_s22  }
  0x32   : > { %266 = sbr.rel (%p263_p3) target bundleno = 799 (0x31f), region = 44  ;;  %s697_s15 = sshll.u32 (!%p263_p3), %s1094_s7, 4 }
  0x33   : > { %s269_s16 = scalar_lea.sflag (!%p263_p3), [#allocation3], %s1094_s7  ;;  %s272_s13 = scalar_lea.vmem (!%p263_p3), [#allocation2], %s697_s15 }
  0x39   : > { %908 = dma.done.wait (%p1029_p8), %s269_s16, 256  }
  0x3a   : > { %910 = vsyncadd (%p1029_p8), %s269_s16, 4294967040  ;;  %v942_v0 = vmov 0.0   ;;  %vm943_vm0 = vmmov 0   ;;  %v944_v1 = vmov 0   ;;  %v810_v2 = vld [vmem:[%s272_s13] sm:$0xff]   ;;  %v811_v3 = vld [vmem:[%s272_s13 + $0x8] sm:$0xff]   ;;  %v544_v42 = vlaneseq }
  0x3b   : > { %716 = vmatprep.subr.bf16.mxu0 %v942_v0  ;;  %720 = vmatprep.mubr.msk.bf16.mxu0 %vm943_vm0, %v942_v0  ;;  %v322_v4 = vld [vmem:[%s1183_s3] sm:$0xff]  ;;  %v323_v6 = vld [vmem:[%s1183_s3 + $0x8] sm:$0xff]  ;;  %vm351_vm1 = vcmask 261120   ;;  %v945_v7 = vmov 0.0|0.0   ;;  %vm415_vm2 = vcmask 130048   ;;  %p308_p8 = scmp.lt.s32.totalorder %s929_s24, 1 }
  0x3c   : > { %808 = vset.pattern.permute.xlu0 %v944_v1  ;;  %728 = vmatprep.mubr.msk.f32.mxu1 %vm943_vm0, %v942_v0  ;;  %v812_v5 = vld [vmem:[%s1182_s2] sm:$0xff]   ;;  %v1122_v45 = vshrl.u32 %v544_v42, 7  ;;  %vm515_vm4 = vcmask 1040384   ;;  %vm549_vm5 = vcmask 1043456   ;;  %s698_s27 = sshll.u32 %s1094_s7, 3  ;;  %s706_s17 = sshll.u32 %s929_s24, 7 }
  0x3d   : > { %809 = vset.pattern.permute.xlu1 %v944_v1  ;;  %717 = vmatpush3.bf16.msra.mxu0 %v810_v2  ;;  %v409_v8 = vld [vmem:[%s1185_s5] sm:$0xff]  ;;  %s309_s15 = scalar_select %p308_p8, %s929_s24, 1 }
  0x3e   : > { %718 = vmatprep.subr.bf16.mxu0 %v942_v0  ;;  %326 = vperm.xlu0 %808, %v322_v4   ;;  %v408_v30 = vld [vmem:[%s1184_s4] sm:$0xff]  ;;  %v546_v53 = vsub.s32 4, %v1122_v45  ;;  %vm564_vm6 = vcmp.eq.s32.totalorder %v1122_v45, 0  ;;  %s307_s8 = scalar_lea.vmem [#allocation5], %s698_s27  ;;  %s579_s24 = scalar_lea.sflag [#allocation4], %s1094_s7 }
  0x3f   : > { %731 = vmatprep.subr.bf16.mxu1 %v945_v7  ;;  %412 = vperm.xlu1 %809, %v409_v8   ;;  %s699_s16 = sshll.u32 %s309_s15, 2  ;;  %s593_s30 = sshll.u32 %s307_s8, 4  ;;  %s1133_s30 = int_to_ptr.vmem [resolvable:$true] %s593_s30 }
  0x40   : > { %s314_s20 = scalar_lea.vmem %s1181_s1, %s699_s16  ;;  %s1131_s16 = scalar_lea.hbm %s1186_s6, %s706_s17 }
  0x41   : > { %719 = vmatpush3.bf16.msra.mxu0 %v811_v3  ;;  %v489_v40 = vld [vmem:[%s314_s20] sm:$0xf]  ;;  %s855_s13 = scalar_lea.vmem %s1133_s30, 128  ;;  %p1194_p11 = scmp.ne.s32.totalorder %s1190_s10, 0 }
  0x42   : > { %331 = vperm.xlu0 %808, %v323_v6   ;;  %v490_v43 = vunpack.c.l.bf16 %v489_v40  ;;  %p856_p9 = scmp.ne.s32.totalorder %s1133_s30, %s855_s13  ;;  %s946_s18 = smov [#allocation5]  }
  0x43   : > { %s859_s20 = sshll.u32 %s946_s18, 4  ;;  %s860_s20 = int_to_ptr.vmem [resolvable:$false] %s859_s20 }
  0x44   : > { %721 = vmatmul.mubr.msk.bf16.vlgmr.msra.gmra.mrb[0].mxu0 %vm351_vm1, %v812_v5  ;;  %v526_v52 = vrot.slane %v490_v43, 7  ;;  %v509_v55 = vrot.slane %v490_v43, 2  ;;  %v547_v62 = vrot.slane %v490_v43, %v546_v53  ;;  %p857_p0 = pnand %p856_p9, %p1194_p11  ;;  %s861_s27 = scalar_lea.vmem %s860_s20, 256 }
  0x45   : > { %p862_p13 = scmp.lt.s32.totalorder %s1133_s30, %s860_s20  ;;  %p863_p2 = scmp.lt.s32.totalorder %s861_s27, %s855_s13 }
  0x46   : > { %p858_p6 = pneg %p857_p0 }
  0x47   : > { %p864_p5 = por %p863_p2, %p862_p13 }
  0x49   : > { %p865_p4 = pnand %p864_p5, %p858_p6 }
  0xbd   : > { %v327_v9 = vpop.permute.xlu0 %326 }
  0xbe   : > { %v413_v31 = vpop.permute.xlu1 %412 }
  0xc1   : > { %v332_v13 = vpop.permute.xlu0 %331 }
 0x117   : > { %v389_v10 = vpop.f32.mrb[0].mxu0 }
 0x118   : > { %v390_v11 = vadd.f32 %v389_v10, %v327_v9  ;;  %v722_v12 = vpop.f32.mrb[1].mxu0 }
 0x119   : > { %v392_v14 = vpop.f32.mrb[2].mxu0 }
 0x11a   : > { %v396_v15 = vsub.f32 0.0, %v390_v11  ;;  %v393_v16 = vadd.f32 %v392_v14, %v332_v13  ;;  %v723_v17 = vpop.f32.mrb[3].mxu0 }
 0x11c   : > { %v398_v18 = vmul.f32 1.442695, %v396_v15  ;;  %v397_v19 = vsub.f32 0.0, %v393_v16 }
 0x11e   : > { %813 = vpow2.f32 %v398_v18  ;;  %v400_v20 = vmul.f32 1.442695, %v397_v19 }
 0x120   : > { %815 = vpow2.f32 %v400_v20 }
 0x128   : > { %v814_v21 = vpop.eup %813 }
 0x129   : > { %v402_v22 = vadd.f32 1.0, %v814_v21 }
 0x12a   : > { %v816_v23 = vpop.eup %815 }
 0x12b   : > { %817 = vrcp.f32 %v402_v22  ;;  %v403_v24 = vadd.f32 1.0, %v816_v23 }
 0x12d   : > { %819 = vrcp.f32 %v403_v24 }
 0x135   : > { %v818_v25 = vpop.eup %817 }
 0x136   : > { %v406_v27 = vmul.f32 %v818_v25, %v390_v11 }
 0x137   : > { %v820_v26 = vpop.eup %819 }
 0x138   : > { %v407_v28 = vmul.f32 %v820_v26, %v393_v16  ;;  %v563_v26 = vand.u32 127, %v544_v42 }
 0x13a   : > { %v732_v29 = vpack.c.bf16 %v407_v28, %v406_v27  ;;  %vm569_vm7 = vcmp.eq.s32.totalorder %v563_v26, 2  ;;  %vm567_vm8 = vcmp.eq.s32.totalorder %v563_v26, 1  ;;  %vm565_vm9 = vcmp.eq.s32.totalorder %v563_v26, 0 }
 0x13b   : > { %vm570_vm10 = vmand %vm564_vm6, %vm569_vm7 }
 0x13c   : > { %733 = vmatpush3.bf16.msra.mxu1 %v732_v29  ;;  %vm568_vm11 = vmand %vm564_vm6, %vm567_vm8 }
 0x13d   : > { %vm566_vm12 = vmand %vm564_vm6, %vm565_vm9 }
 0x13f   : > { %729 = vmatmul.mubr.msk.f32.vlgmr.msra.gmra.mrb[0].mxu1 %vm415_vm2, %v408_v30 }
 0x212   : > { %v485_v32 = vpop.f32.mrb[0].mxu1 }
 0x213   : > { %v486_v33 = vadd.f32 %v485_v32, %v413_v31  ;;  %v730_v34 = vpop.f32.mrb[1].mxu1 }
 0x215   : > { %v494_v35 = vand.u32 2147483647, %v486_v33  ;;  %v491_v46 = vmax.f32 %v486_v33, 0.0  ;;  %v492_v47 = vmul.f32 %v490_v43, %v486_v33  ;;  %v542_v56 = vsub.f32 %v486_v33, %v490_v43 }
 0x217   : > { %v495_v36 = vsub.f32 0.0, %v494_v35  ;;  %v493_v54 = vsub.f32 %v491_v46, %v492_v47  ;;  %v543_v61 = vand.u32 2147483647, %v542_v56 }
 0x219   : > { %v496_v37 = vmul.f32 1.442695, %v495_v36  ;;  %v548_v3 = vmul.f32 %v547_v62, %v543_v61 }
 0x21b   : > { %821 = vpow2.f32 %v496_v37  ;;  %v550_v4 = vsel %vm549_vm5, %v548_v3, 0.0 }
 0x225   : > { %v822_v38 = vpop.eup %821 }
 0x226   : > { %v498_v39 = vadd.f32 1.0, %v822_v38  ;;  %v501_v41 = vmul.f32 -0.5, %v822_v38  ;;  %v504_v48 = vand.u32 2147483647, %v822_v38 }
 0x228   : > { %823 = vlog2.f32 %v498_v39  ;;  %v502_v44 = vadd.f32 1.0, %v501_v41  ;;  %vm505_vm3 = vcmp.lt.f32.partialorder %v504_v48, 0.0004427343 }
 0x22a   : > { %v503_v51 = vmul.f32 %v822_v38, %v502_v44 }
 0x232   : > { %v824_v49 = vpop.eup %823 }
 0x233   : > { %v500_v50 = vmul.f32 0.6931472, %v824_v49 }
 0x235   : > { %v506_v57 = vsel %vm505_vm3, %v503_v51, %v500_v50 }
 0x236   : > { %v507_v58 = vadd.f32 %v506_v57, %v493_v54 }
 0x238   : > { %v528_v59 = vmul.f32 %v526_v52, %v507_v58  ;;  %v511_v60 = vmul.f32 %v509_v55, %v507_v58 }
 0x23a   : > { %v530_v63 = vrot.slane %v528_v59, 5  ;;  %v513_v0 = vrot.slane %v511_v60, 4 }
 0x23c   : > { %v532_v1 = vsel %vm515_vm4, %v530_v63, 0.0  ;;  %v516_v2 = vsel %vm515_vm4, %v513_v0, 0.0 }
 0x23d   : > { %533 = vadd.xlane.f32.xlu0 %v532_v1  ;;  %517 = vadd.xlane.f32.xlu1 %v516_v2 }
 0x241   : > { %551 = vadd.xlane.f32.xlu0 %v550_v4 }
 0x2ca   : > { %v534_v5 = vpop.xlane.xlu0 %533  ;;  %v518_v6 = vpop.xlane.xlu1 %517 }
 0x2cb   : > { %v535_v7 = vrot.slane %v534_v5, 4  ;;  %v519_v8 = vrot.slane %v518_v6, 4 }
 0x2cd   : > { %v536_v9 = vadd.f32 %v535_v7, %v534_v5  ;;  %v520_v10 = vadd.f32 %v519_v8, %v518_v6 }
 0x2ce   : > { %v552_v11 = vpop.xlane.xlu0 %551 }
 0x2cf   : > { %v537_v12 = vrot.slane %v536_v9, 2  ;;  %v521_v13 = vrot.slane %v520_v10, 2  ;;  %v553_v14 = vrot.slane %v552_v11, 4 }
 0x2d1   : > { %v554_v15 = vadd.f32 %v553_v14, %v552_v11  ;;  %v522_v16 = vadd.f32 %v521_v13, %v520_v10  ;;  %v538_v17 = vadd.f32 %v537_v12, %v536_v9 }
 0x2d3   : > { %v555_v18 = vrot.slane %v554_v15, 2  ;;  %v523_v19 = vrot.slane %v522_v16, 1  ;;  %v539_v20 = vrot.slane %v538_v17, 1 }
 0x2d5   : > { %v556_v21 = vadd.f32 %v555_v18, %v554_v15  ;;  %v524_v22 = vadd.f32 %v523_v19, %v522_v16  ;;  %v540_v23 = vadd.f32 %v539_v20, %v538_v17 }
 0x2d7   : > { %734 = vpush %v524_v22  ;;  %v557_v24 = vrot.slane %v556_v21, 1 }
 0x2d8   : > { %736 = vpush %v540_v23 }
 0x2d9   : > { %v558_v25 = vadd.f32 %v557_v24, %v556_v21 }
 0x2db   : > { %738 = vpush %v558_v25 }
 0x308   : > { %s735_s9 = spop %734 }
 0x309   : > { %s737_s28 = spop %736  ;;  %v575_v30 = vstv %s735_s9 }
 0x30a   : > { %v573_v28 = vstv %s737_s28 }
 0x30c   : > { %s739_s19 = spop %738 }
 0x30d   : > { %v571_v27 = vstv %s739_s19 }
 0x30e   : > { %v572_v29 = vsel %vm570_vm10, %v571_v27, 0.0 }
 0x30f   : > { %v574_v31 = vsel %vm568_vm11, %v573_v28, %v572_v29 }
 0x310   : > { %v576_v32 = vsel %vm566_vm12, %v575_v30, %v574_v31 }
 0x311   : > { %577 = vst [vmem:[%s307_s8] sm:$0xff] %v576_v32 }
 0x312   : > { %868 = shalt.err (!%p865_p4)
}
 0x313   : > { %s869_s7 = scalar_lea.hbm %s1131_s16, 128  ;;  %s873_s17 = scalar_lea.hbm %s1186_s6, 256 }
 0x314   : > { %p870_p7 = scmp.ne.s32.totalorder %s1131_s16, %s869_s7  ;;  %p874_p1 = scmp.lt.u32.totalorder %s1131_s16, %s1186_s6 }
 0x315   : > { %p875_p3 = scmp.lt.u32.totalorder %s873_s17, %s869_s7  ;;  %p877_p9 = scmp.lt.u32.totalorder %s869_s7, %s1131_s16 }
 0x316   : > { %p871_p10 = pnand %p870_p7, %p1194_p11 }
 0x317   : > { %p876_p8 = por %p875_p3, %p874_p1 }
 0x318   : > { %p872_p12 = pneg %p871_p10 }
 0x319   : > { %p878_p0 = por %p877_p9, %p876_p8 }
 0x31b   : > { %p879_p6 = pnand %p878_p0, %p872_p12 }
 0x31d   : > { %882 = shalt.err (!%p879_p6)
}
 0x31e   : > { %742 = dma.vmem_to_hbm [thread:$0]  (%p1194_p11), %s1133_s30, 128, %s1131_s16, %s579_s24  }
 0x31f PF: > { %s605_s14 = sand.u32 1, %s917_s21   ;;  %p1195_p13 = scmp.ne.s32.totalorder %s1191_s12, 0 }
 0x320   : > { %p1196_p2 = scmp.ge.s32.totalorder %s937_s26, 2  ;;  %s606_s15 = scalar_lea.sflag [#allocation4], %s605_s14 }
 0x322   : > { %p749_p5 = pnand %p1196_p2, %p1195_p13 }
 0x324   : > { %912 = dma.done.wait (!%p749_p5), %s606_s15, 128  }
 0x325   : > { %914 = vsyncadd (!%p749_p5), %s606_s15, 4294967168  ;;  %s22_s26 = sadd.s32 1, %s937_s26   ;;  %s1197_s21 = smov %s921_s22 }
 0x326   : > { %p19_p4 = scmp.ge.s32.totalorder %s22_s26, 4   ;;  %s1198_s22 = smov %s925_s23 }
 0x327   : > { %s1199_s23 = smov %s1038_s11  ;;  %s1200_s24 = smov %s933_s25 }
 0x328   : > { %s1201_s25 = smov %s1203_s29  ;;  %21 = sbr.rel (!%p19_p4) target bundleno = 6 (0x6), region = 92 }
 0x32f   :  { %611 = vsyncpa [#allocation3], 1 }
 0x330   :  { %613 = vsyncpa [#allocation3 + $0x1], 1 }
 0x331   :  { %614 = vsyncpa [#allocation4], 1 }
 0x332   :  { %616 = vsyncpa [#allocation4 + $0x1], 1 }

</bundles_post_ra>
